<compile_context>
chip_gen: v7x
topology: tpu7x:2x2x1
jax: 0.10.0
libtpu: 0.0.40
codegen_flags: <defaults>
</compile_context>

<pallas_src>
import jax
import jax.numpy as jnp
from jax.experimental import pallas as pl
from jax.experimental.pallas import tpu as pltpu


def _round_up(a, m):
    return ((a + m - 1) // m) * m


def nn4d_kernel(x_ref, w1_ref, b1_ref, w2_ref, b2_ref,
                w3_ref, b3_ref, w4_ref, b4_ref, o_ref):
    # fc1 + ReLU (dropout eval mode -> identity). bf16 MXU operands, f32 accumulation,
    # f32 elementwise.
    h = jnp.dot(x_ref[...].astype(jnp.bfloat16), w1_ref[...],
                preferred_element_type=jnp.float32)
    h = jnp.maximum(h + b1_ref[...], 0.0)
    # fc2 + ReLU
    h = jnp.dot(h.astype(jnp.bfloat16), w2_ref[...],
                preferred_element_type=jnp.float32)
    h = jnp.maximum(h + b2_ref[...], 0.0)
    # fc3 + ReLU (output columns zero-padded to 128 -> lane-dense intermediate)
    h = jnp.dot(h.astype(jnp.bfloat16), w3_ref[...],
                preferred_element_type=jnp.float32)
    h = jnp.maximum(h + b3_ref[...], 0.0)
    # fc4 (no ReLU) + sigmoid
    y = jnp.dot(h.astype(jnp.bfloat16), w4_ref[...],
                preferred_element_type=jnp.float32)
    y = y + b4_ref[...]
    # Numerically-stable sigmoid: exp argument always <= 0 (never overflows); the
    # divide uses the approx EUP reciprocal, which is nearly free after the exp.
    pos = pl.reciprocal(1.0 + jnp.exp(-jnp.abs(y)), approx=True)
    o_ref[...] = jnp.where(y >= 0.0, pos, 1.0 - pos)


def nn4d_forward(x, w1, b1, w2, b2, w3, b3, w4, b4, *, block_b=1024):
    """x: (B, d_in) f32; weights stored as (in_features, out_features); biases (1, N)."""
    B, d_in = x.shape
    h1 = w1.shape[1]
    h2 = w2.shape[1]
    h3 = w3.shape[1]
    d_out = w4.shape[1]

    # ---- pad the narrow hidden dim (64) up to a full lane width (128) ----
    h3p = _round_up(h3, 128)
    if h3p != h3:
        w3 = jnp.pad(w3, ((0, 0), (0, h3p - h3)))
        b3 = jnp.pad(b3, ((0, 0), (0, h3p - h3)))
        w4 = jnp.pad(w4, ((0, h3p - h3), (0, 0)))

    # ---- bf16 MXU operands: cast weights once here; biases / x stay f32 ----
    w1 = w1.astype(jnp.bfloat16)
    w2 = w2.astype(jnp.bfloat16)
    w3 = w3.astype(jnp.bfloat16)
    w4 = w4.astype(jnp.bfloat16)
    b1 = b1.astype(jnp.float32)
    b2 = b2.astype(jnp.float32)
    b3 = b3.astype(jnp.float32)
    b4 = b4.astype(jnp.float32)
    x = x.astype(jnp.float32)

    # ---- batch tiling: sublane-aligned; >=2 tiles at large B (v7x has 2 TCs);
    #      multiple of 256 once big enough (v6e/v7x MXU rows), capped at block_b ----
    tb = _round_up(max(1, (B + 1) // 2), 8)
    if tb >= 256:
        tb = _round_up(tb, 256)
    tb = min(block_b, tb)
    b_pad = _round_up(B, tb)
    if b_pad != B:
        x = jnp.pad(x, ((0, b_pad - B), (0, 0)))
    grid = (b_pad // tb,)

    def resident(arr):
        # Constant index_map -> weight/bias stays VMEM-resident across batch tiles;
        # Buffered(1): no double-buffering of constants (VMEM hygiene for v7x).
        return pl.BlockSpec(arr.shape, lambda i: (0, 0),
                            pipeline_mode=pl.Buffered(1))

    flops = 2 * b_pad * (d_in * h1 + h1 * h2 + h2 * h3p + h3p * d_out)
    bytes_accessed = (
        b_pad * d_in * 4                                          # x (f32)
        + (d_in * h1 + h1 * h2 + h2 * h3p + h3p * d_out) * 2      # bf16 weights
        + (h1 + h2 + h3p + d_out) * 4                             # f32 biases
        + b_pad * d_out * 4                                       # f32 output
    )
    cost = pl.CostEstimate(flops=flops,
                           transcendentals=b_pad * d_out,
                           bytes_accessed=bytes_accessed)

    out = pl.pallas_call(
        nn4d_kernel,
        out_shape=jax.ShapeDtypeStruct((b_pad, d_out), jnp.float32),
        grid_spec=pltpu.PrefetchScalarGridSpec(
            num_scalar_prefetch=0,
            grid=grid,
            in_specs=[
                pl.BlockSpec((tb, d_in), lambda i: (i, 0)),
                resident(w1), resident(b1),
                resident(w2), resident(b2),
                resident(w3), resident(b3),
                resident(w4), resident(b4),
            ],
            # Real (unpadded) output width: avoids 8x padded write traffic + a slice.
            out_specs=pl.BlockSpec((tb, d_out), lambda i: (i, 0)),
        ),
        compiler_params=pltpu.CompilerParams(
            dimension_semantics=("parallel",),   # v7x: shard batch tiles across 2 TCs
        ),
        cost_estimate=cost,
    )(x, w1, b1, w2, b2, w3, b3, w4, b4)

    if b_pad != B:
        out = out[:B]
    return out


if __name__ == "__main__":
    batch = 8
    input_size = 32
    output_size = 16
    h1, h2, h3 = 256, 128, 64

    key = jax.random.PRNGKey(0)
    kx, k1, kb1, k2, kb2, k3, kb3, k4, kb4 = jax.random.split(key, 9)

    def init_linear(kw, kb, fan_in, fan_out):
        # PyTorch-style uniform init, bound = 1/sqrt(fan_in); stored transposed.
        bound = 1.0 / jnp.sqrt(jnp.float32(fan_in))
        w = jax.random.uniform(kw, (fan_in, fan_out), jnp.float32, -bound, bound)
        b = jax.random.uniform(kb, (1, fan_out), jnp.float32, -bound, bound)
        return w, b

    x = jax.random.normal(kx, (batch, input_size), dtype=jnp.float32)
    w1, b1 = init_linear(k1, kb1, input_size, h1)
    w2, b2 = init_linear(k2, kb2, h1, h2)
    w3, b3 = init_linear(k3, kb3, h2, h3)
    w4, b4 = init_linear(k4, kb4, h3, output_size)

    out = nn4d_forward(x, w1, b1, w2, b2, w3, b3, w4, b4)
    jax.block_until_ready(out)

    # Pure-JAX f32 reference (eval-mode dropout = identity).
    h = jnp.maximum(x @ w1 + b1, 0.0)
    h = jnp.maximum(h @ w2 + b2, 0.0)
    h = jnp.maximum(h @ w3 + b3, 0.0)
    ref = jax.nn.sigmoid(h @ w4 + b4)

    assert out.shape == (batch, output_size)
    # bf16 MXU operands + approx reciprocal -> relaxed tolerance vs. the f32 reference.
    err = float(jnp.max(jnp.abs(out - ref)))
    assert jnp.allclose(out, ref, atol=2e-2, rtol=2e-2), err

    print("KERNEL_OK")
</pallas_src>

<mosaic_0001>
module attributes {stable_mosaic.version = 11 : i64} {
  func.func @nn4d_kernel(%arg0: i32, %arg1: memref<8x32xf32, #tpu.memory_space<vmem>>, %arg2: memref<32x256xbf16, #tpu.memory_space<vmem>>, %arg3: memref<1x256xf32, #tpu.memory_space<vmem>>, %arg4: memref<256x128xbf16, #tpu.memory_space<vmem>>, %arg5: memref<1x128xf32, #tpu.memory_space<vmem>>, %arg6: memref<128x128xbf16, #tpu.memory_space<vmem>>, %arg7: memref<1x128xf32, #tpu.memory_space<vmem>>, %arg8: memref<128x16xbf16, #tpu.memory_space<vmem>>, %arg9: memref<1x16xf32, #tpu.memory_space<vmem>>, %arg10: memref<8x16xf32, #tpu.memory_space<vmem>>) attributes {dimension_semantics = [#tpu.dimension_semantics<parallel>], iteration_bounds = array<i64: 1>, scalar_prefetch = 0 : i64, scratch_operands = 0 : i64, tpu.core_type = #tpu.core_type<tc>, window_params = [{transform_indices = @transform_0, window_bounds = array<i64: 8, 32>}, {pipeline_mode = #tpu.pipeline_mode<synchronous>, transform_indices = @transform_1, window_bounds = array<i64: 32, 256>}, {pipeline_mode = #tpu.pipeline_mode<synchronous>, transform_indices = @transform_2, window_bounds = array<i64: 1, 256>}, {pipeline_mode = #tpu.pipeline_mode<synchronous>, transform_indices = @transform_3, window_bounds = array<i64: 256, 128>}, {pipeline_mode = #tpu.pipeline_mode<synchronous>, transform_indices = @transform_4, window_bounds = array<i64: 1, 128>}, {pipeline_mode = #tpu.pipeline_mode<synchronous>, transform_indices = @transform_5, window_bounds = array<i64: 128, 128>}, {pipeline_mode = #tpu.pipeline_mode<synchronous>, transform_indices = @transform_6, window_bounds = array<i64: 1, 128>}, {pipeline_mode = #tpu.pipeline_mode<synchronous>, transform_indices = @transform_7, window_bounds = array<i64: 128, 16>}, {pipeline_mode = #tpu.pipeline_mode<synchronous>, transform_indices = @transform_8, window_bounds = array<i64: 1, 16>}, {transform_indices = @transform_9, window_bounds = array<i64: 8, 16>}]} {
    %c0 = arith.constant 0 : index
    %c0_0 = arith.constant 0 : index
    %0 = vector.load %arg1[%c0, %c0_0] : memref<8x32xf32, #tpu.memory_space<vmem>>, vector<8x32xf32>
    %1 = arith.truncf %0 : vector<8x32xf32> to vector<8x32xbf16>
    %c0_1 = arith.constant 0 : index
    %c0_2 = arith.constant 0 : index
    %2 = vector.load %arg2[%c0_1, %c0_2] : memref<32x256xbf16, #tpu.memory_space<vmem>>, vector<32x256xbf16>
    %cst = arith.constant dense<0.000000e+00> : vector<8x256xf32>
    %3 = tpu.matmul %1, %2, %cst {dimension_numbers = #tpu.dot_dimension_numbers<[1], [0], [0], [1], [0, 0, 1, 1], [], []>} : vector<8x32xbf16>, vector<32x256xbf16>, vector<8x256xf32> -> vector<8x256xf32>
    %c0_3 = arith.constant 0 : index
    %c0_4 = arith.constant 0 : index
    %4 = vector.load %arg3[%c0_3, %c0_4] : memref<1x256xf32, #tpu.memory_space<vmem>>, vector<1x256xf32>
    %5 = vector.broadcast %4 : vector<1x256xf32> to vector<8x256xf32>
    %6 = arith.addf %3, %5 : vector<8x256xf32>
    %cst_5 = arith.constant 0.000000e+00 : f32
    %7 = vector.broadcast %cst_5 : f32 to vector<8x256xf32>
    %8 = arith.maximumf %6, %7 : vector<8x256xf32>
    %9 = arith.truncf %8 : vector<8x256xf32> to vector<8x256xbf16>
    %c0_6 = arith.constant 0 : index
    %c0_7 = arith.constant 0 : index
    %10 = vector.load %arg4[%c0_6, %c0_7] : memref<256x128xbf16, #tpu.memory_space<vmem>>, vector<256x128xbf16>
    %cst_8 = arith.constant dense<0.000000e+00> : vector<8x128xf32>
    %11 = tpu.matmul %9, %10, %cst_8 {dimension_numbers = #tpu.dot_dimension_numbers<[1], [0], [0], [1], [0, 0, 1, 1], [], []>} : vector<8x256xbf16>, vector<256x128xbf16>, vector<8x128xf32> -> vector<8x128xf32>
    %c0_9 = arith.constant 0 : index
    %c0_10 = arith.constant 0 : index
    %12 = vector.load %arg5[%c0_9, %c0_10] : memref<1x128xf32, #tpu.memory_space<vmem>>, vector<1x128xf32>
    %13 = vector.broadcast %12 : vector<1x128xf32> to vector<8x128xf32>
    %14 = arith.addf %11, %13 : vector<8x128xf32>
    %cst_11 = arith.constant 0.000000e+00 : f32
    %15 = vector.broadcast %cst_11 : f32 to vector<8x128xf32>
    %16 = arith.maximumf %14, %15 : vector<8x128xf32>
    %17 = arith.truncf %16 : vector<8x128xf32> to vector<8x128xbf16>
    %c0_12 = arith.constant 0 : index
    %c0_13 = arith.constant 0 : index
    %18 = vector.load %arg6[%c0_12, %c0_13] : memref<128x128xbf16, #tpu.memory_space<vmem>>, vector<128x128xbf16>
    %cst_14 = arith.constant dense<0.000000e+00> : vector<8x128xf32>
    %19 = tpu.matmul %17, %18, %cst_14 {dimension_numbers = #tpu.dot_dimension_numbers<[1], [0], [0], [1], [0, 0, 1, 1], [], []>} : vector<8x128xbf16>, vector<128x128xbf16>, vector<8x128xf32> -> vector<8x128xf32>
    %c0_15 = arith.constant 0 : index
    %c0_16 = arith.constant 0 : index
    %20 = vector.load %arg7[%c0_15, %c0_16] : memref<1x128xf32, #tpu.memory_space<vmem>>, vector<1x128xf32>
    %21 = vector.broadcast %20 : vector<1x128xf32> to vector<8x128xf32>
    %22 = arith.addf %19, %21 : vector<8x128xf32>
    %cst_17 = arith.constant 0.000000e+00 : f32
    %23 = vector.broadcast %cst_17 : f32 to vector<8x128xf32>
    %24 = arith.maximumf %22, %23 : vector<8x128xf32>
    %25 = arith.truncf %24 : vector<8x128xf32> to vector<8x128xbf16>
    %c0_18 = arith.constant 0 : index
    %c0_19 = arith.constant 0 : index
    %26 = vector.load %arg8[%c0_18, %c0_19] : memref<128x16xbf16, #tpu.memory_space<vmem>>, vector<128x16xbf16>
    %cst_20 = arith.constant dense<0.000000e+00> : vector<8x16xf32>
    %27 = tpu.matmul %25, %26, %cst_20 {dimension_numbers = #tpu.dot_dimension_numbers<[1], [0], [0], [1], [0, 0, 1, 1], [], []>} : vector<8x128xbf16>, vector<128x16xbf16>, vector<8x16xf32> -> vector<8x16xf32>
    %c0_21 = arith.constant 0 : index
    %c0_22 = arith.constant 0 : index
    %28 = vector.load %arg9[%c0_21, %c0_22] : memref<1x16xf32, #tpu.memory_space<vmem>>, vector<1x16xf32>
    %29 = vector.broadcast %28 : vector<1x16xf32> to vector<8x16xf32>
    %30 = arith.addf %27, %29 : vector<8x16xf32>
    %31 = math.absf %30 : vector<8x16xf32>
    %cst_23 = arith.constant 0.000000e+00 : f32
    %32 = vector.broadcast %cst_23 : f32 to vector<8x16xf32>
    %33 = arith.subf %32, %31 : vector<8x16xf32>
    %34 = math.exp %33 : vector<8x16xf32>
    %cst_24 = arith.constant 1.000000e+00 : f32
    %35 = vector.broadcast %cst_24 : f32 to vector<8x16xf32>
    %36 = arith.addf %35, %34 : vector<8x16xf32>
    %37 = tpu.reciprocal %36 {approx = true} : vector<8x16xf32> -> vector<8x16xf32>
    %cst_25 = arith.constant 0.000000e+00 : f32
    %38 = vector.broadcast %cst_25 : f32 to vector<8x16xf32>
    %39 = arith.cmpf oge, %30, %38 : vector<8x16xf32>
    %cst_26 = arith.constant 1.000000e+00 : f32
    %40 = vector.broadcast %cst_26 : f32 to vector<8x16xf32>
    %41 = arith.subf %40, %37 : vector<8x16xf32>
    %42 = arith.select %39, %37, %41 : vector<8x16xi1>, vector<8x16xf32>
    %c0_27 = arith.constant 0 : index
    %c0_28 = arith.constant 0 : index
    %43 = vector.load %arg10[%c0_27, %c0_28] : memref<8x16xf32, #tpu.memory_space<vmem>>, vector<8x16xf32>
    tpu.vector_store %arg10[%c0_27, %c0_28], %42 {strides = array<i32>} : memref<8x16xf32, #tpu.memory_space<vmem>>, vector<8x16xf32>,
    return
  }
  func.func @transform_0(%arg0: i32) -> (i32, i32) {
    %c0_i32 = arith.constant 0 : i32
    %c0_i32_0 = arith.constant 0 : i32
    return %arg0, %c0_i32 : i32, i32
  }
  func.func @transform_1(%arg0: i32) -> (i32, i32) {
    %c0_i32 = arith.constant 0 : i32
    %c0_i32_0 = arith.constant 0 : i32
    %c0_i32_1 = arith.constant 0 : i32
    return %c0_i32, %c0_i32_0 : i32, i32
  }
  func.func @transform_2(%arg0: i32) -> (i32, i32) {
    %c0_i32 = arith.constant 0 : i32
    %c0_i32_0 = arith.constant 0 : i32
    %c0_i32_1 = arith.constant 0 : i32
    return %c0_i32, %c0_i32_0 : i32, i32
  }
  func.func @transform_3(%arg0: i32) -> (i32, i32) {
    %c0_i32 = arith.constant 0 : i32
    %c0_i32_0 = arith.constant 0 : i32
    %c0_i32_1 = arith.constant 0 : i32
    return %c0_i32, %c0_i32_0 : i32, i32
  }
  func.func @transform_4(%arg0: i32) -> (i32, i32) {
    %c0_i32 = arith.constant 0 : i32
    %c0_i32_0 = arith.constant 0 : i32
    %c0_i32_1 = arith.constant 0 : i32
    return %c0_i32, %c0_i32_0 : i32, i32
  }
  func.func @transform_5(%arg0: i32) -> (i32, i32) {
    %c0_i32 = arith.constant 0 : i32
    %c0_i32_0 = arith.constant 0 : i32
    %c0_i32_1 = arith.constant 0 : i32
    return %c0_i32, %c0_i32_0 : i32, i32
  }
  func.func @transform_6(%arg0: i32) -> (i32, i32) {
    %c0_i32 = arith.constant 0 : i32
    %c0_i32_0 = arith.constant 0 : i32
    %c0_i32_1 = arith.constant 0 : i32
    return %c0_i32, %c0_i32_0 : i32, i32
  }
  func.func @transform_7(%arg0: i32) -> (i32, i32) {
    %c0_i32 = arith.constant 0 : i32
    %c0_i32_0 = arith.constant 0 : i32
    %c0_i32_1 = arith.constant 0 : i32
    return %c0_i32, %c0_i32_0 : i32, i32
  }
  func.func @transform_8(%arg0: i32) -> (i32, i32) {
    %c0_i32 = arith.constant 0 : i32
    %c0_i32_0 = arith.constant 0 : i32
    %c0_i32_1 = arith.constant 0 : i32
    return %c0_i32, %c0_i32_0 : i32, i32
  }
  func.func @transform_9(%arg0: i32) -> (i32, i32) {
    %c0_i32 = arith.constant 0 : i32
    %c0_i32_0 = arith.constant 0 : i32
    return %arg0, %c0_i32 : i32, i32
  }
}

</mosaic_0001>

<bundles_post_ra>
// kernel: tpu_custom_call.1
= control target key start
LH: loop header
LB: loop body
LE: loop exit
PB: predicated region body
PF: predicated region fallthrough
CT: control target
= control target key end

     0   :  { %14 = vsyncpa [#allocation3], 0  ;;  %s998_s0 = inlined_call_operand.vmem [shape: f32[8,32], index: 0, kind: input, shape index: {}]   ;;  %s999_s1 = inlined_call_operand.hbm [shape: bf16[32,256], index: 1, kind: input, shape index: {}]   ;;  %s1000_s2 = inlined_call_operand.vmem [shape: f32[1,256], index: 2, kind: input, shape index: {}]   ;;  %s1001_s3 = inlined_call_operand.hbm [shape: bf16[256,128], index: 3, kind: input, shape index: {}]   ;;  %s1002_s4 = inlined_call_operand.vmem [shape: f32[1,128], index: 4, kind: input, shape index: {}]   ;;  %s1003_s5 = inlined_call_operand.vmem [shape: bf16[128,128], index: 5, kind: input, shape index: {}]   ;;  %s1004_s6 = inlined_call_operand.vmem [shape: f32[1,128], index: 6, kind: input, shape index: {}]   ;;  %s1005_s7 = inlined_call_operand.vmem [shape: bf16[128,16], index: 7, kind: input, shape index: {}]   ;;  %s1006_s8 = inlined_call_operand.vmem [shape: f32[1,16], index: 8, kind: input, shape index: {}]   ;;  %s1007_s9 = inlined_call_operand.hbm [shape: f32[8,16], index: 9, kind: output, shape index: {}]  }
   0x1   :  { %15 = vsyncpa [#allocation6], 0 }
   0x2   :  { %16 = vsyncpa [#allocation4], 0  ;;  %s821_s30 = smov [#allocation2]   ;;  %s749_s13 = scalar_lea.hbm %s999_s1, 512 }
   0x3   :  { %s24_s10 = sshll.u32 %s821_s30, 4  ;;  %p750_p0 = scmp.ne.s32.totalorder %s999_s1, %s749_s13  ;;  %s25_s10 = int_to_ptr.vmem [resolvable:$true] %s24_s10 }
   0x4   :  { %p753_p1 = scmp.lt.u32.totalorder %s749_s13, %s999_s1 }
   0x6   :  { %p755_p2 = pnand %p753_p1, %p750_p0 }
   0x8   :  { %758 = shalt.err (!%p755_p2)
}
   0x9   :  { %s759_s18 = scalar_lea.vmem %s25_s10, 512  ;;  %p764_p4 = scmp.lt.s32.totalorder %s25_s10, %s25_s10 }
   0xa   :  { %p760_p3 = scmp.ne.s32.totalorder %s25_s10, %s759_s18  ;;  %p765_p5 = scmp.lt.s32.totalorder %s759_s18, %s759_s18 }
   0xc   :  { %p766_p6 = por %p765_p5, %p764_p4 }
   0xe   :  { %p767_p7 = pnand %p766_p6, %p760_p3 }
  0x10   :  { %770 = shalt.err (!%p767_p7)
}
  0x11   :  { %s822_s19 = smov 128   ;;  %s823_s20 = smov 8  }
  0x12   :  { %30 = dma.hbm_to_vmem [thread:$0]  %s999_s1, 512, %s25_s10, [#allocation3], %s822_s19, %s822_s19, %s823_s20  }
  0x13   :  { %s824_s23 = smov [#allocation5]   ;;  %s771_s27 = scalar_lea.hbm %s1001_s3, 2048 }
  0x14   :  { %s38_s24 = sshll.u32 %s824_s23, 4  ;;  %p772_p8 = scmp.ne.s32.totalorder %s1001_s3, %s771_s27  ;;  %s39_s24 = int_to_ptr.vmem [resolvable:$true] %s38_s24 }
  0x15   :  { %p775_p9 = scmp.lt.u32.totalorder %s771_s27, %s1001_s3 }
  0x17   :  { %p777_p10 = pnand %p775_p9, %p772_p8 }
  0x19   :  { %780 = shalt.err (!%p777_p10)
}
  0x1a   :  { %s781_s12 = scalar_lea.vmem %s39_s24, 2048  ;;  %p786_p12 = scmp.lt.s32.totalorder %s39_s24, %s39_s24 }
  0x1b   :  { %p782_p11 = scmp.ne.s32.totalorder %s39_s24, %s781_s12  ;;  %p787_p13 = scmp.lt.s32.totalorder %s781_s12, %s781_s12 }
  0x1d   :  { %p788_p0 = por %p787_p13, %p786_p12 }
  0x1f   :  { %p789_p1 = pnand %p788_p0, %p782_p11 }
  0x21   :  { %792 = shalt.err (!%p789_p1)
}
  0x22   :  { %s825_s1 = smov 64   ;;  %s826_s10 = smov 4  }
  0x23   :  { %44 = dma.hbm_to_vmem [thread:$0]  %s1001_s3, 2048, %s39_s24, [#allocation6], %s825_s1, %s825_s1, %s826_s10  }
  0x24   :  { %815 = dma.done.wait [#allocation3], 512  }
  0x25   :  { %816 = vsyncadd [#allocation3], 4294966784 }
  0x26   :  { %817 = dma.done.wait [#allocation6], 2048  }
  0x27   :  { %818 = vsyncadd [#allocation6], 4294965248  ;;  %v827_v0 = vmov 0   ;;  %v707_v1 = vld [vmem:[#allocation2 + $0x4] ss:$8 sps:$4 sm:$0xff]   ;;  %vm100_vm0 = vcmask 261120   ;;  %v70_v30 = vlaneseq }
  0x28   :  { %136 = vmatprep.mubr.bf16.mxu0 %v827_v0  ;;  %v709_v2 = vld [vmem:[#allocation2] ss:$8 sps:$4 sm:$0xff]   ;;  %104 = vmatprep.subr.bf16.mxu0 %v707_v1  ;;  %v710_v3 = vld [vmem:[#allocation2 + $0x14] ss:$8 sps:$4 sm:$0xff]   ;;  %v712_v4 = vld [vmem:[#allocation2 + $0x10] ss:$8 sps:$4 sm:$0xff]  }
  0x29   :  { %v62_v5 = vld [vmem:[%s998_s0] sm:$0xff]  ;;  %105 = vmatpush1.bf16.msra.mxu0 %v709_v2  ;;  %v715_v8 = vld [vmem:[#allocation5 + $0x48] sm:$0xff]   ;;  %v717_v11 = vld [vmem:[#allocation5 + $0x50] sm:$0xff]   ;;  %v828_v24 = vmov 0.0   ;;  %v71_v31 = vshrl.u32 %v70_v30, 7  ;;  %vm829_vm1 = vmmov 0  }
  0x2a   :  { %v713_v6 = vld [vmem:[#allocation5 + $0x40] sm:$0xff]   ;;  %106 = vmatprep.subr.bf16.mxu0 %v710_v3  ;;  %v63_v9 = vpack.c.bf16 %v62_v5, %v62_v5  ;;  %v716_v10 = vld [vmem:[#allocation5 + $0x8] sm:$0xff]   ;;  %v718_v12 = vld [vmem:[#allocation5 + $0x10] sm:$0xff]   ;;  %vm559_vm2 = vcmask 130048  }
  0x2b   :  { %v714_v7 = vld [vmem:[#allocation5] sm:$0xff]   ;;  %617 = vmatprep.subr.bf16.mxu1 %v713_v6  ;;  %v719_v13 = vld [vmem:[#allocation5 + $0x58] sm:$0xff]   ;;  %v723_v17 = vld [vmem:[#allocation5 + $0x68] sm:$0xff]   ;;  %v72_v32 = vsub.s32 0, %v71_v31  ;;  %v76_v34 = vsub.s32 1, %v71_v31 }
  0x2c   :  { %618 = vmatpush3.bf16.msra.mxu1 %v714_v7  ;;  %v720_v14 = vld [vmem:[#allocation5 + $0x18] sm:$0xff]   ;;  %v721_v15 = vld [vmem:[#allocation5 + $0x60] sm:$0xff]   ;;  %v724_v18 = vld [vmem:[#allocation5 + $0x28] sm:$0xff]  }
  0x2d   :  { %107 = vmatpush1.bf16.msra.mxu0 %v712_v4  ;;  %619 = vmatprep.subr.bf16.mxu1 %v715_v8  ;;  %v722_v16 = vld [vmem:[#allocation5 + $0x20] sm:$0xff]   ;;  %v725_v19 = vld [vmem:[#allocation5 + $0x70] sm:$0xff]   ;;  %v727_v21 = vld [vmem:[#allocation5 + $0x78] sm:$0xff]  }
  0x2e   :  { %v726_v20 = vld [vmem:[#allocation5 + $0x30] sm:$0xff]   ;;  %v728_v22 = vld [vmem:[#allocation5 + $0x38] sm:$0xff]   ;;  %v729_v23 = vld [vmem:[%s1003_s5] sm:$0xff]   ;;  %657 = vmatprep.subr.bf16.mxu0 %v828_v24 }
  0x2f   :  { %v730_v25 = vld [vmem:[%s1003_s5 + $0x8] sm:$0xff]   ;;  %v731_v26 = vld [vmem:[%s1003_s5 + $0x10] sm:$0xff]   ;;  %v732_v27 = vld [vmem:[%s1003_s5 + $0x18] sm:$0xff]  }
  0x30   :  { %581 = vmatmul.mubr.msk.bf16.vlgmr.msra.gmra.mrb[0].mxu0 %vm100_vm0, %v63_v9  ;;  %620 = vmatpush3.bf16.msra.mxu1 %v716_v10  ;;  %v733_v28 = vld [vmem:[%s1003_s5 + $0x20] sm:$0xff]   ;;  %v734_v29 = vld [vmem:[%s1003_s5 + $0x28] sm:$0xff]   ;;  %v735_v47 = vld [vmem:[%s1003_s5 + $0x30] sm:$0xff]  }
  0x31   :  { %621 = vmatprep.subr.bf16.mxu1 %v717_v11  ;;  %658 = vmatpush3.bf16.msra.mxu0 %v729_v23  ;;  %v68_v33 = vld [vmem:[%s1000_s2] sm:$0x3]  ;;  %v736_v48 = vld [vmem:[%s1003_s5 + $0x38] sm:$0xff]   ;;  %v738_v50 = vld [vmem:[%s1005_s7 + $0x8] sm:$0xff]  }
  0x32   :  { %659 = vmatprep.subr.bf16.mxu0 %v828_v24  ;;  %v73_v35 = vrot.slane %v68_v33, %v72_v32  ;;  %v77_v36 = vrot.slane %v68_v33, %v76_v34  ;;  %673 = vmatprep.mubr.msk.bf16.mxu0 %vm829_vm1, %v828_v24  ;;  %v737_v49 = vld [vmem:[%s1005_s7] sm:$0xff]   ;;  %v739_v51 = vld [vmem:[%s1005_s7 + $0x10] sm:$0xff]   ;;  %v740_v52 = vld [vmem:[%s1005_s7 + $0x18] sm:$0xff]  }
  0x33   :  { %v741_v53 = vld [vmem:[%s1005_s7 + $0x20] sm:$0xff]   ;;  %v742_v54 = vld [vmem:[%s1005_s7 + $0x28] sm:$0xff]   ;;  %v743_v0 = vld [vmem:[%s1005_s7 + $0x30] sm:$0xff]  }
  0x34   :  { %622 = vmatpush3.bf16.msra.mxu1 %v718_v12  ;;  %v582_v56 = vld [vmem:[%s1002_s4] ss:$0 sm:$0xff]  ;;  %v744_v1 = vld [vmem:[%s1005_s7 + $0x38] sm:$0xff]  }
  0x35   :  { %623 = vmatprep.subr.bf16.mxu1 %v719_v13  ;;  %660 = vmatpush3.bf16.msra.mxu0 %v730_v25  ;;  %v599_v2 = vld [vmem:[%s1004_s6] ss:$0 sm:$0xff]  ;;  %s830_s6 = smov [#allocation7]  }
  0x36   :  { %661 = vmatprep.subr.bf16.mxu0 %v828_v24  ;;  %v608_v10 = vld [vmem:[%s1006_s8] ss:$0 sm:$0xff]  ;;  %s567_s7 = sshll.u32 %s830_s6, 4  ;;  %s568_s7 = int_to_ptr.vmem [resolvable:$true] %s567_s7 }
  0x37   :  { %s793_s8 = scalar_lea.vmem %s568_s7, 128  ;;  %p798_p3 = scmp.lt.s32.totalorder %s568_s7, %s568_s7 }
  0x38   :  { %624 = vmatpush3.bf16.msra.mxu1 %v720_v14  ;;  %p794_p2 = scmp.ne.s32.totalorder %s568_s7, %s793_s8  ;;  %p799_p4 = scmp.lt.s32.totalorder %s793_s8, %s793_s8 }
  0x39   :  { %625 = vmatprep.subr.bf16.mxu1 %v721_v15  ;;  %662 = vmatpush3.bf16.msra.mxu0 %v731_v26 }
  0x3a   :  { %663 = vmatprep.subr.bf16.mxu0 %v828_v24  ;;  %p800_p5 = por %p799_p4, %p798_p3 }
  0x3c   :  { %626 = vmatpush3.bf16.msra.mxu1 %v722_v16  ;;  %p801_p6 = pnand %p800_p5, %p794_p2 }
  0x3d   :  { %627 = vmatprep.subr.bf16.mxu1 %v723_v17  ;;  %664 = vmatpush3.bf16.msra.mxu0 %v732_v27 }
  0x3e   :  { %665 = vmatprep.subr.bf16.mxu0 %v828_v24 }
  0x40   :  { %628 = vmatpush3.bf16.msra.mxu1 %v724_v18 }
  0x41   :  { %629 = vmatprep.subr.bf16.mxu1 %v725_v19  ;;  %666 = vmatpush3.bf16.msra.mxu0 %v733_v28 }
  0x42   :  { %667 = vmatprep.subr.bf16.mxu0 %v828_v24 }
  0x44   :  { %630 = vmatpush3.bf16.msra.mxu1 %v726_v20 }
  0x45   :  { %631 = vmatprep.subr.bf16.mxu1 %v727_v21  ;;  %668 = vmatpush3.bf16.msra.mxu0 %v734_v29 }
  0x46   :  { %669 = vmatprep.subr.bf16.mxu0 %v828_v24 }
  0x48   :  { %632 = vmatpush3.bf16.msra.mxu1 %v728_v22 }
  0x49   :  { %677 = vmatprep.subr.bf16.mxu1 %v828_v24  ;;  %670 = vmatpush3.bf16.msra.mxu0 %v735_v47 }
  0x4a   :  { %671 = vmatprep.subr.bf16.mxu0 %v828_v24 }
  0x4d   :  { %672 = vmatpush3.bf16.msra.mxu0 %v736_v48 }
 0x103   :  { %v138_v37 = vpop.f32.mrb[0].mxu0 }
 0x104   :  { %v139_v38 = vadd.f32 %v138_v37, %v73_v35  ;;  %v140_v39 = vpop.f32.mrb[1].mxu0 }
 0x105   :  { %v141_v40 = vadd.f32 %v140_v39, %v77_v36  ;;  %v142_v41 = vpop.f32.mrb[2].mxu0 }
 0x106   :  { %v145_v42 = vmax.f32 %v139_v38, 0.0  ;;  %v143_v43 = vpop.f32.mrb[3].mxu0 }
 0x107   :  { %v146_v44 = vmax.f32 %v141_v40, 0.0 }
 0x108   :  { %v147_v46 = vpack.c.bf16 %v145_v42, %v145_v42 }
 0x109   :  { %v148_v45 = vpack.c.bf16 %v146_v44, %v146_v44 }
 0x10b   :  { %316 = vmatprep.mubr.bf16.mxu1 %v148_v45 }
 0x10c   :  { %317 = vmatmul.mubr.bf16.vlgmr.msra.gmra.mrb[0].mxu1 %v147_v46 }
 0x10d   :  { %693 = vmatprep.mubr.msk.bf16.mxu1 %vm829_vm1, %v828_v24  ;;  %678 = vmatpush3.bf16.msra.mxu1 %v737_v49 }
 0x10e   :  { %679 = vmatprep.subr.bf16.mxu1 %v828_v24 }
 0x111   :  { %680 = vmatpush3.bf16.msra.mxu1 %v738_v50 }
 0x112   :  { %681 = vmatprep.subr.bf16.mxu1 %v828_v24 }
 0x115   :  { %682 = vmatpush3.bf16.msra.mxu1 %v739_v51 }
 0x116   :  { %683 = vmatprep.subr.bf16.mxu1 %v828_v24 }
 0x119   :  { %684 = vmatpush3.bf16.msra.mxu1 %v740_v52 }
 0x11a   :  { %685 = vmatprep.subr.bf16.mxu1 %v828_v24 }
 0x11d   :  { %686 = vmatpush3.bf16.msra.mxu1 %v741_v53 }
 0x11e   :  { %687 = vmatprep.subr.bf16.mxu1 %v828_v24 }
 0x121   :  { %688 = vmatpush3.bf16.msra.mxu1 %v742_v54 }
 0x122   :  { %689 = vmatprep.subr.bf16.mxu1 %v828_v24 }
 0x125   :  { %690 = vmatpush3.bf16.msra.mxu1 %v743_v0 }
 0x126   :  { %691 = vmatprep.subr.bf16.mxu1 %v828_v24 }
 0x129   :  { %692 = vmatpush3.bf16.msra.mxu1 %v744_v1 }
 0x1df   :  { %v633_v55 = vpop.f32.mrb[0].mxu1 }
 0x1e0   :  { %v634_v57 = vpop.f32.mrb[1].mxu1 }
 0x1e1   :  { %v635_v58 = vadd.f32 %v634_v57, %v633_v55  ;;  %v636_v59 = vpop.f32.mrb[2].mxu1 }
 0x1e2   :  { %v637_v60 = vpop.f32.mrb[3].mxu1 }
 0x1e3   :  { %v319_v61 = vadd.f32 %v635_v58, %v582_v56 }
 0x1e5   :  { %v324_v62 = vmax.f32 %v319_v61, 0.0 }
 0x1e7   :  { %v325_v63 = vpack.c.bf16 %v324_v62, %v324_v62 }
 0x1e9   :  { %674 = vmatmul.mubr.bf16.vlgmr.msra.gmra.mrb[4].mxu0 %v325_v63 }
 0x2bc   :  { %v431_v3 = vpop.f32.mrb[4].mxu0 }
 0x2bd   :  { %v432_v4 = vadd.f32 %v599_v2, %v431_v3  ;;  %v675_v5 = vpop.f32.mrb[5].mxu0 }
 0x2be   :  { %v434_v6 = vpop.f32.mrb[6].mxu0 }
 0x2bf   :  { %v437_v7 = vmax.f32 %v432_v4, 0.0  ;;  %v676_v8 = vpop.f32.mrb[7].mxu0 }
 0x2c1   :  { %v438_v9 = vpack.c.bf16 %v437_v7, %v437_v7 }
 0x2c3   :  { %694 = vmatmul.mubr.bf16.vlgmr.msra.gmra.mrb[4].mxu1 %v438_v9 }
 0x396   :  { %v544_v11 = vpop.f32.mrb[4].mxu1 }
 0x397   :  { %v545_v12 = vadd.f32 %v608_v10, %v544_v11  ;;  %v695_v13 = vpop.f32.mrb[5].mxu1 }
 0x398   :  { %v547_v14 = vpop.f32.mrb[6].mxu1 }
 0x399   :  { %v550_v15 = vand.u32 2147483647, %v545_v12  ;;  %v696_v16 = vpop.f32.mrb[7].mxu1  ;;  %vm556_vm3 = vcmp.ge.f32.partialorder %v545_v12, 0.0 }
 0x39b   :  { %v551_v17 = vsub.f32 0.0, %v550_v15 }
 0x39d   :  { %v552_v18 = vmul.f32 1.442695, %v551_v17 }
 0x39f   :  { %745 = vpow2.f32 %v552_v18 }
 0x3a9   :  { %v746_v19 = vpop.eup %745 }
 0x3aa   :  { %v554_v20 = vadd.f32 1.0, %v746_v19 }
 0x3ac   :  { %747 = vrcp.f32 %v554_v20 }
 0x3b6   :  { %v748_v21 = vpop.eup %747 }
 0x3b7   :  { %v557_v22 = vsub.f32 1.0, %v748_v21 }
 0x3b9   :  { %v558_v23 = vsel %vm556_vm3, %v748_v21, %v557_v22 }
 0x3ba   :  { %560 = vst.msk [vmem:[#allocation7] sm:$0xff] %vm559_vm2, %v558_v23 }
 0x3bb   :  { %804 = shalt.err (!%p801_p6)
}
 0x3bc   :  { %s805_s30 = scalar_lea.hbm %s1007_s9, 128 }
 0x3bd   :  { %p806_p7 = scmp.ne.s32.totalorder %s1007_s9, %s805_s30  ;;  %p809_p8 = scmp.lt.u32.totalorder %s805_s30, %s1007_s9 }
 0x3bf   :  { %p811_p9 = pnand %p809_p8, %p806_p7 }
 0x3c1   :  { %814 = shalt.err (!%p811_p9)
}
 0x3c2   :  { %570 = dma.vmem_to_hbm [thread:$0]  %s568_s7, 128, %s1007_s9, [#allocation4]  }
 0x3c3   :  { %819 = dma.done.wait [#allocation4], 128  }
 0x3c4   :  { %820 = vsyncadd [#allocation4], 4294967168 }
 0x3c5   :  { %574 = vsyncpa [#allocation3], 1 }
 0x3c6   :  { %575 = vsyncpa [#allocation6], 1 }
 0x3c7   :  { %576 = vsyncpa [#allocation4], 1 }

</bundles_post_ra>
